<compile_context>
chip_gen: v7x
topology: tpu7x:2x2x1
jax: 0.10.0
libtpu: 0.0.40
codegen_flags: <defaults>
</compile_context>

<pallas_src>
import functools

import jax
import jax.numpy as jnp
from jax.experimental import pallas as pl
from jax.experimental.pallas import tpu as pltpu


def value_nn_kernel(tx_ref, small_ref, w2_ref, wh_ref, out_ref):
    # Per-batch inputs, batch along lanes.
    t_row = tx_ref[0:1, :]                       # (1, TB)
    x0 = tx_ref[1:2, :]                          # (1, TB)
    x1 = tx_ref[2:3, :]                          # (1, TB)

    # Packed small parameters.
    w1c = small_ref[:, 0:1]                      # (H, 1)  l1.weight[:, 0]
    b1c = small_ref[:, 1:2]                      # (H, 1)  l1.bias
    b2c = small_ref[:, 2:3]                      # (H, 1)  l2.bias
    bhc = small_ref[0:8, 3:4]                    # (8, 1)  fused head bias

    # Layer 1: K=1 contraction -> VPU broadcast outer product (no MXU trip).
    h = jnp.maximum(w1c * t_row + b1c, 0.0)      # (H, TB) f32

    # Layer 2: (H, H) @ (H, TB) on the MXU (weights optionally bf16).
    h = jnp.dot(w2_ref[...], h.astype(w2_ref.dtype),
                preferred_element_type=jnp.float32)
    h = jnp.maximum(h + b2c, 0.0)                # (H, TB) f32

    # Fused heads: rows 0..3 = 2x2 matrix (row-major), row 4 = offset.
    head = jnp.dot(wh_ref[...], h, preferred_element_type=jnp.float32) + bhc

    m00 = head[0:1, :]
    m01 = head[1:2, :]
    m10 = head[2:3, :]
    m11 = head[3:4, :]
    off = head[4:5, :]

    # Q = 0.5 (M + M^T) + 1e-3 I  =>  x^T Q x =
    #   (m00 + 1e-3) x0^2 + (m01 + m10) x0 x1 + (m11 + 1e-3) x1^2
    quad = ((m00 + 1e-3) * x0 * x0
            + (m01 + m10) * x0 * x1
            + (m11 + 1e-3) * x1 * x1)

    out_ref[...] = quad + off                    # (1, TB) lane-dense store


@functools.partial(jax.jit, static_argnames=("block_b",))
def value_nn_forward(t, x, params, *, block_b=128):
    """t: (B, 1) f32, x: (B, 2) f32 -> (B,) f32."""
    small, w2, wh = params
    H = small.shape[0]
    B = t.shape[0]
    TB = block_b
    B_pad = pl.cdiv(B, TB) * TB

    # Pack per-batch inputs into one lane-major (8, B_pad) slab (1 DMA/block).
    tx = jnp.zeros((8, B_pad), jnp.float32)
    tx = tx.at[0, :B].set(t[:, 0])
    tx = tx.at[1, :B].set(x[:, 0])
    tx = tx.at[2, :B].set(x[:, 1])

    grid = (B_pad // TB,)
    flops = 2 * B_pad * H * (H + 8) + 3 * B_pad * H
    bytes_accessed = (tx.size * 4 + small.size * 4 + wh.size * 4
                      + w2.size * w2.dtype.itemsize + B_pad * 4)

    out = pl.pallas_call(
        value_nn_kernel,
        out_shape=jax.ShapeDtypeStruct((1, B_pad), jnp.float32),
        grid=grid,
        in_specs=[
            pl.BlockSpec((8, TB), lambda i: (0, i)),   # packed (t, x0, x1)
            pl.BlockSpec((H, 8), lambda i: (0, 0)),    # packed small params
            pl.BlockSpec((H, H), lambda i: (0, 0)),    # W2, VMEM-resident
            pl.BlockSpec((8, H), lambda i: (0, 0)),    # fused heads, resident
        ],
        out_specs=pl.BlockSpec((1, TB), lambda i: (0, i)),
        compiler_params=pltpu.CompilerParams(
            dimension_semantics=("parallel",)),
        cost_estimate=pl.CostEstimate(
            flops=flops, transcendentals=0, bytes_accessed=bytes_accessed),
    )(tx, small, w2, wh)
    return out[0, :B]


def init_params(key, hidden_dim=128, w2_dtype=jnp.float32):
    """Deterministic init mirroring the torch module's parameter shapes.

    torch: l1.weight (H,1), l1.bias (H,), l2.weight (H,H), l2.bias (H,),
           matrix.weight (4,H), matrix.bias (4,), offset.weight (1,H),
           offset.bias (1,).
    Packed as:
      small (H, 8): col0 l1.weight, col1 l1.bias, col2 l2.bias,
                    col3[0:8] fused head bias (matrix.bias ++ offset.bias ++ 0)
      w2    (H, H): l2.weight (optionally bf16)
      wh    (8, H): rows 0..3 matrix.weight, row 4 offset.weight, rows 5..7 0
    """
    H = hidden_dim
    ks = jax.random.split(key, 8)

    def u(k, shape, fan_in):
        bound = 1.0 / jnp.sqrt(jnp.float32(fan_in))
        return jax.random.uniform(k, shape, jnp.float32, -bound, bound)

    w1 = u(ks[0], (H,), 1)           # l1.weight[:, 0]
    b1 = u(ks[1], (H,), 1)
    w2 = u(ks[2], (H, H), H)         # l2.weight
    b2 = u(ks[3], (H,), H)
    wm = u(ks[4], (4, H), H)         # matrix.weight
    bm = u(ks[5], (4,), H)
    wo = u(ks[6], (1, H), H)         # offset.weight
    bo = u(ks[7], (1,), H)

    bh = jnp.concatenate([bm, bo, jnp.zeros((3,), jnp.float32)])        # (8,)
    small = jnp.zeros((H, 8), jnp.float32)
    small = small.at[:, 0].set(w1).at[:, 1].set(b1).at[:, 2].set(b2)
    small = small.at[0:8, 3].set(bh)

    wh = jnp.concatenate([wm, wo, jnp.zeros((3, H), jnp.float32)], 0)   # (8,H)
    return (small, w2.astype(w2_dtype), wh)


def reference_forward(t, x, params):
    """Pure-JAX f32 reference matching the PyTorch forward semantics."""
    small, w2, wh = params
    w1 = small[:, 0]
    b1 = small[:, 1]
    b2 = small[:, 2]
    bh = small[0:8, 3]
    w2 = w2.astype(jnp.float32)

    h = jnp.maximum(t * w1[None, :] + b1[None, :], 0.0)      # (B, H)
    h = jnp.maximum(h @ w2.T + b2[None, :], 0.0)             # (B, H)
    head = h @ wh.T + bh[None, :]                            # (B, 8)
    m = head[:, 0:4].reshape(-1, 2, 2)
    q = 0.5 * (m + jnp.swapaxes(m, 1, 2)) + 1e-3 * jnp.eye(2, dtype=jnp.float32)
    quad = jnp.einsum("bi,bij,bj->b", x, q, x)
    return quad + head[:, 4]


if __name__ == "__main__":
    B, H = 200, 128   # B not a multiple of 128 on purpose: exercises padding
    key = jax.random.PRNGKey(0)
    kp, kt, kx = jax.random.split(key, 3)

    t = jax.random.uniform(kt, (B, 1), jnp.float32)
    x = jax.random.normal(kx, (B, 2), jnp.float32)

    # f32 weights: faithful to the PyTorch forward numerics.
    params_f32 = init_params(kp, hidden_dim=H, w2_dtype=jnp.float32)
    out = jax.block_until_ready(value_nn_forward(t, x, params_f32))
    ref = reference_forward(t, x, params_f32)
    assert out.shape == (B,)
    assert jnp.allclose(out, ref, atol=1e-3, rtol=1e-3), \
        float(jnp.max(jnp.abs(out - ref)))

    # bf16 W2 variant (halves the only non-trivial weight DMA); loose check.
    params_bf16 = init_params(kp, hidden_dim=H, w2_dtype=jnp.bfloat16)
    out_bf = jax.block_until_ready(value_nn_forward(t, x, params_bf16))
    scale = 1.0 + float(jnp.max(jnp.abs(ref)))
    assert float(jnp.max(jnp.abs(out_bf - ref))) / scale < 0.1

    print("KERNEL_OK")
</pallas_src>

<mosaic_0001>
module attributes {stable_mosaic.version = 11 : i64} {
  func.func @value_nn_kernel(%arg0: i32, %arg1: memref<8x128xf32, #tpu.memory_space<vmem>>, %arg2: memref<128x8xf32, #tpu.memory_space<vmem>>, %arg3: memref<128x128xf32, #tpu.memory_space<vmem>>, %arg4: memref<8x128xf32, #tpu.memory_space<vmem>>, %arg5: memref<1x128xf32, #tpu.memory_space<vmem>>) attributes {dimension_semantics = [#tpu.dimension_semantics<parallel>], iteration_bounds = array<i64: 2>, scalar_prefetch = 0 : i64, scratch_operands = 0 : i64, tpu.core_type = #tpu.core_type<tc>, window_params = [{transform_indices = @transform_0, window_bounds = array<i64: 8, 128>}, {pipeline_mode = #tpu.pipeline_mode<synchronous>, transform_indices = @transform_1, window_bounds = array<i64: 128, 8>}, {pipeline_mode = #tpu.pipeline_mode<synchronous>, transform_indices = @transform_2, window_bounds = array<i64: 128, 128>}, {pipeline_mode = #tpu.pipeline_mode<synchronous>, transform_indices = @transform_3, window_bounds = array<i64: 8, 128>}, {transform_indices = @transform_4, window_bounds = array<i64: 1, 128>}]} {
    %c0 = arith.constant 0 : index
    %c0_0 = arith.constant 0 : index
    %0 = vector.load %arg1[%c0, %c0_0] : memref<8x128xf32, #tpu.memory_space<vmem>>, vector<1x128xf32>
    %c1 = arith.constant 1 : index
    %c0_1 = arith.constant 0 : index
    %1 = vector.load %arg1[%c1, %c0_1] : memref<8x128xf32, #tpu.memory_space<vmem>>, vector<1x128xf32>
    %c2 = arith.constant 2 : index
    %c0_2 = arith.constant 0 : index
    %2 = vector.load %arg1[%c2, %c0_2] : memref<8x128xf32, #tpu.memory_space<vmem>>, vector<1x128xf32>
    %c0_3 = arith.constant 0 : index
    %c0_4 = arith.constant 0 : index
    %3 = vector.load %arg2[%c0_3, %c0_4] : memref<128x8xf32, #tpu.memory_space<vmem>>, vector<128x1xf32>
    %c0_5 = arith.constant 0 : index
    %c1_6 = arith.constant 1 : index
    %4 = vector.load %arg2[%c0_5, %c1_6] : memref<128x8xf32, #tpu.memory_space<vmem>>, vector<128x1xf32>
    %c0_7 = arith.constant 0 : index
    %c2_8 = arith.constant 2 : index
    %5 = vector.load %arg2[%c0_7, %c2_8] : memref<128x8xf32, #tpu.memory_space<vmem>>, vector<128x1xf32>
    %c0_9 = arith.constant 0 : index
    %c3 = arith.constant 3 : index
    %6 = vector.load %arg2[%c0_9, %c3] : memref<128x8xf32, #tpu.memory_space<vmem>>, vector<8x1xf32>
    %7 = vector.broadcast %3 : vector<128x1xf32> to vector<128x128xf32>
    %8 = vector.broadcast %0 : vector<1x128xf32> to vector<128x128xf32>
    %9 = arith.mulf %7, %8 : vector<128x128xf32>
    %10 = vector.broadcast %4 : vector<128x1xf32> to vector<128x128xf32>
    %11 = arith.addf %9, %10 : vector<128x128xf32>
    %cst = arith.constant 0.000000e+00 : f32
    %12 = vector.broadcast %cst : f32 to vector<128x128xf32>
    %13 = arith.maximumf %11, %12 : vector<128x128xf32>
    %c0_10 = arith.constant 0 : index
    %c0_11 = arith.constant 0 : index
    %14 = vector.load %arg3[%c0_10, %c0_11] : memref<128x128xf32, #tpu.memory_space<vmem>>, vector<128x128xf32>
    %cst_12 = arith.constant dense<0.000000e+00> : vector<128x128xf32>
    %15 = tpu.matmul %14, %13, %cst_12 {dimension_numbers = #tpu.dot_dimension_numbers<[1], [0], [0], [1], [0, 0, 1, 1], [], []>} : vector<128x128xf32>, vector<128x128xf32>, vector<128x128xf32> -> vector<128x128xf32>
    %16 = vector.broadcast %5 : vector<128x1xf32> to vector<128x128xf32>
    %17 = arith.addf %15, %16 : vector<128x128xf32>
    %cst_13 = arith.constant 0.000000e+00 : f32
    %18 = vector.broadcast %cst_13 : f32 to vector<128x128xf32>
    %19 = arith.maximumf %17, %18 : vector<128x128xf32>
    %c0_14 = arith.constant 0 : index
    %c0_15 = arith.constant 0 : index
    %20 = vector.load %arg4[%c0_14, %c0_15] : memref<8x128xf32, #tpu.memory_space<vmem>>, vector<8x128xf32>
    %cst_16 = arith.constant dense<0.000000e+00> : vector<8x128xf32>
    %21 = tpu.matmul %20, %19, %cst_16 {dimension_numbers = #tpu.dot_dimension_numbers<[1], [0], [0], [1], [0, 0, 1, 1], [], []>} : vector<8x128xf32>, vector<128x128xf32>, vector<8x128xf32> -> vector<8x128xf32>
    %22 = vector.broadcast %6 : vector<8x1xf32> to vector<8x128xf32>
    %23 = arith.addf %21, %22 : vector<8x128xf32>
    %24 = vector.extract_strided_slice %23 {offsets = [0, 0], sizes = [1, 128], strides = [1, 1]} : vector<8x128xf32> to vector<1x128xf32>
    %25 = vector.extract_strided_slice %23 {offsets = [1, 0], sizes = [1, 128], strides = [1, 1]} : vector<8x128xf32> to vector<1x128xf32>
    %26 = vector.extract_strided_slice %23 {offsets = [2, 0], sizes = [1, 128], strides = [1, 1]} : vector<8x128xf32> to vector<1x128xf32>
    %27 = vector.extract_strided_slice %23 {offsets = [3, 0], sizes = [1, 128], strides = [1, 1]} : vector<8x128xf32> to vector<1x128xf32>
    %28 = vector.extract_strided_slice %23 {offsets = [4, 0], sizes = [1, 128], strides = [1, 1]} : vector<8x128xf32> to vector<1x128xf32>
    %cst_17 = arith.constant 1.000000e-03 : f32
    %29 = vector.broadcast %cst_17 : f32 to vector<1x128xf32>
    %30 = arith.addf %24, %29 : vector<1x128xf32>
    %31 = arith.mulf %30, %1 : vector<1x128xf32>
    %32 = arith.mulf %31, %1 : vector<1x128xf32>
    %33 = arith.addf %25, %26 : vector<1x128xf32>
    %34 = arith.mulf %33, %1 : vector<1x128xf32>
    %35 = arith.mulf %34, %2 : vector<1x128xf32>
    %36 = arith.addf %32, %35 : vector<1x128xf32>
    %cst_18 = arith.constant 1.000000e-03 : f32
    %37 = vector.broadcast %cst_18 : f32 to vector<1x128xf32>
    %38 = arith.addf %27, %37 : vector<1x128xf32>
    %39 = arith.mulf %38, %2 : vector<1x128xf32>
    %40 = arith.mulf %39, %2 : vector<1x128xf32>
    %41 = arith.addf %36, %40 : vector<1x128xf32>
    %42 = arith.addf %41, %28 : vector<1x128xf32>
    %c0_19 = arith.constant 0 : index
    %c0_20 = arith.constant 0 : index
    %43 = vector.load %arg5[%c0_19, %c0_20] : memref<1x128xf32, #tpu.memory_space<vmem>>, vector<1x128xf32>
    tpu.vector_store %arg5[%c0_19, %c0_20], %42 {strides = array<i32>} : memref<1x128xf32, #tpu.memory_space<vmem>>, vector<1x128xf32>,
    return
  }
  func.func @transform_0(%arg0: i32) -> (i32, i32) {
    %c0_i32 = arith.constant 0 : i32
    %c0_i32_0 = arith.constant 0 : i32
    return %c0_i32, %arg0 : i32, i32
  }
  func.func @transform_1(%arg0: i32) -> (i32, i32) {
    %c0_i32 = arith.constant 0 : i32
    %c0_i32_0 = arith.constant 0 : i32
    %c0_i32_1 = arith.constant 0 : i32
    return %c0_i32, %c0_i32_0 : i32, i32
  }
  func.func @transform_2(%arg0: i32) -> (i32, i32) {
    %c0_i32 = arith.constant 0 : i32
    %c0_i32_0 = arith.constant 0 : i32
    %c0_i32_1 = arith.constant 0 : i32
    return %c0_i32, %c0_i32_0 : i32, i32
  }
  func.func @transform_3(%arg0: i32) -> (i32, i32) {
    %c0_i32 = arith.constant 0 : i32
    %c0_i32_0 = arith.constant 0 : i32
    %c0_i32_1 = arith.constant 0 : i32
    return %c0_i32, %c0_i32_0 : i32, i32
  }
  func.func @transform_4(%arg0: i32) -> (i32, i32) {
    %c0_i32 = arith.constant 0 : i32
    %c0_i32_0 = arith.constant 0 : i32
    return %c0_i32, %arg0 : i32, i32
  }
}

</mosaic_0001>

<bundles_post_ra>
// kernel: value_nn_forward.1
= control target key start
LH: loop header
LB: loop body
LE: loop exit
PB: predicated region body
PF: predicated region fallthrough
CT: control target
= control target key end

     0   :  { %9 = vsyncpa [#allocation3], 0  ;;  %s1485_s0 = inlined_call_operand.vmem [shape: f32[8,256], index: 0, kind: input, shape index: {}]   ;;  %s1486_s1 = inlined_call_operand.vmem [shape: f32[128,8], index: 1, kind: input, shape index: {}]   ;;  %s1487_s2 = inlined_call_operand.vmem [shape: f32[128,128], index: 2, kind: input, shape index: {}]   ;;  %s1488_s3 = inlined_call_operand.vmem [shape: f32[8,128], index: 3, kind: input, shape index: {}]   ;;  %s1489_s4 = inlined_call_operand.hbm [shape: f32[1,256], index: 4, kind: output, shape index: {}]  }
   0x1   :  { %11 = vsyncpa [#allocation3 + $0x1], 0  ;;  %s1191_s15 = smov 0   ;;  %s1193_s16 = smov 0  }
   0x2   :  { %s1195_s17 = smov 0   ;;  %s1197_s18 = smov 0  }
   0x3 LB: > { %s1212_s19 = sadd.s32 4294967295, %s1156_s18   ;;  %s822_s20 = sadd.s32 4294967294, %s1156_s18   ;;  %s1156_s18 = sphi %s1197_s18, %s1495_s18   ;;  %s1152_s17 = sphi %s1195_s17, %s1494_s17   ;;  %s1148_s16 = sphi %s1193_s16, %s1493_s16   ;;  %s1144_s15 = sphi %s1191_s15, %s1492_s15  }
   0x4   : > { %s1216_s21 = sadd.s32 1, %s1156_s18   ;;  %s113_s22 = sadd.s32 1, %s1152_s17 }
   0x5   : > { %s110_s23 = ssub.s32 %s1156_s18, %s1216_s21  ;;  %p123_p0 = scmp.ne.s32.totalorder %s1152_s17, %s1148_s16 }
   0x6   : > { %p111_p1 = scmp.eq.s32.totalorder %s110_s23, 0  ;;  %p124_p2 = scmp.eq.s32.totalorder %s1212_s19, 1 }
   0x7   : > { %p129_p3 = scmp.ne.s32.totalorder %s1148_s16, %s1144_s15  ;;  %p130_p4 = scmp.eq.s32.totalorder %s822_s20, 1 }
   0x8   : > { %s1227_s24 = scalar_select %p111_p1, %s1152_s17, %s113_s22  }
   0x9   : > { %p1229_p5 = por %p124_p2, %p123_p0  ;;  %p1233_p6 = por %p130_p4, %p129_p3 }
   0xa   : > { %p825_p7 = scmp.ge.s32.totalorder %s1156_s18, 1  ;;  %p164_p8 = scmp.lt.s32.totalorder %s1156_s18, 3 }
   0xc   : > { %p165_p9 = pnand %p825_p7, %p164_p8 }
   0xd   : > { %v1242_v0 = vld [vmem:[%s1486_s1 + $0x10] sm:$0xff] (!%p165_p9)  ;;  %v1247_v1 = vld [vmem:[%s1486_s1] sm:$0xff] (!%p165_p9)  ;;  %v1158_v2 = vmov (!%p165_p9), 1   ;;  %v1261_v4 = vld [vmem:[%s1486_s1 + $0x8] sm:$0xff] (!%p165_p9)  ;;  %v1159_v7 = vmov (!%p165_p9), 0   ;;  %v1160_v19 = vmov (!%p165_p9), 2  }
   0xe   : > { %168 = sbr.rel (%p165_p9) target bundleno = 733 (0x2dd), region = 36  ;;  %1075 = vset.pattern.permute.xlu0 (!%p165_p9), %v1158_v2  ;;  %1073 = vset.pattern.permute.xlu1 (!%p165_p9), %v1158_v2  ;;  %v1256_v3 = vld [vmem:[%s1486_s1 + $0x30] sm:$0xff] (!%p165_p9)  ;;  %v1273_v6 = vld [vmem:[%s1486_s1 + $0x18] sm:$0xff] (!%p165_p9)  ;;  %v199_v8 = vld [vmem:[%s1486_s1 + $0x20] sm:$0xff] (!%p165_p9)  ;;  %p188_p10 = scmp.lt.s32.totalorder (!%p165_p9), %s1212_s19, 1  ;;  %vm1162_vm0 = vmmov (!%p165_p9), 0  }
   0xf   : > { %320 = vperm.xlu0 (!%p165_p9), %1075, %v1242_v0   ;;  %312 = vperm.xlu1 (!%p165_p9), %1073, %v1247_v1   ;;  %v1268_v5 = vld [vmem:[%s1486_s1 + $0x50] sm:$0xff] (!%p165_p9)  ;;  %v200_v9 = vld [vmem:[%s1486_s1 + $0x28] sm:$0xff] (!%p165_p9)  ;;  %v202_v11 = vld [vmem:[%s1486_s1 + $0x38] sm:$0xff] (!%p165_p9)  ;;  %s186_s6 = sand.u32 (!%p165_p9), 1, %s1148_s16  }
  0x10   : > { %v1293_v10 = vld [vmem:[%s1486_s1 + $0x48] sm:$0xff] (!%p165_p9)  ;;  %v203_v13 = vld [vmem:[%s1486_s1 + $0x40] sm:$0xff] (!%p165_p9)  ;;  %v1313_v14 = vld [vmem:[%s1486_s1 + $0x70] sm:$0xff] (!%p165_p9)  ;;  %s187_s7 = scalar_lea.vmem (!%p165_p9), [#allocation2], %s186_s6  ;;  %s755_s12 = scalar_lea.sflag (!%p165_p9), [#allocation3], %s186_s6 }
  0x11   : > { %v1304_v12 = vld [vmem:[%s1486_s1 + $0x68] sm:$0xff] (!%p165_p9)  ;;  %v206_v15 = vld [vmem:[%s1486_s1 + $0x58] sm:$0xff] (!%p165_p9)  ;;  %v207_v16 = vld [vmem:[%s1486_s1 + $0x60] sm:$0xff] (!%p165_p9)  ;;  %s767_s8 = sshll.u32 (!%p165_p9), %s187_s7, 4  ;;  %s1445_s8 = int_to_ptr.vmem [resolvable:$true] %s767_s8 }
  0x12   : > { %v1332_v17 = vld [vmem:[%s1486_s1 + $0x78] sm:$0xff] (!%p165_p9)  ;;  %v407_v18 = vld [vmem:[%s1487_s2] sm:$0xff] (!%p165_p9)  ;;  %s1094_s13 = scalar_lea.vmem (!%p165_p9), %s1445_s8, 16 }
  0x13   : > { %336 = vperm.xlu0 (!%p165_p9), %1075, %v1256_v3   ;;  %316 = vperm.xlu1 (!%p165_p9), %1073, %v1261_v4   ;;  %p1095_p11 = scmp.ne.s32.totalorder (!%p165_p9), %s1445_s8, %s1094_s13 }
  0x14   : > { %912 = vmatprep.mubr.f32.mxu0 (!%p165_p9), %v407_v18 }
  0x15   : > { %s189_s27 = scalar_select %p188_p10, %s1212_s19, 1 }
  0x16   : > { %p1096_p12 = pnand %p1095_p11, %p1229_p5 }
  0x17   : > { %352 = vperm.xlu0 %1075, %v1268_v5   ;;  %1074 = vset.pattern.permute.xlu1 %v1159_v7  ;;  %s826_s28 = sshll.u32 %s189_s27, 3 }
  0x18   : > { %228 = vperm.xlu1 %1074, %v1273_v6   ;;  %s1352_s5 = scalar_lea.vmem %s1485_s0, %s826_s28  ;;  %p1097_p13 = pneg %p1096_p12 }
  0x19   : > { %v1355_v26 = vld [vmem:[%s1352_s5] ss:$0 sm:$0xff] }
  0x1b   : > { %1084 = vset.pattern.permute.xlu0 %v1159_v7 }
  0x1c   : > { %213 = vperm.xlu0 %1084, %v1247_v1   ;;  %1076 = vset.pattern.permute.xlu1 %v1158_v2 }
  0x1d   : > { %324 = vperm.xlu1 %1076, %v1273_v6  }
  0x20   : > { %218 = vperm.xlu0 %1084, %v1261_v4  }
  0x21   : > { %1077 = vset.pattern.permute.xlu1 %v1159_v7 }
  0x22   : > { %233 = vperm.xlu1 %1077, %v199_v8  }
  0x24   : > { %223 = vperm.xlu0 %1084, %v1242_v0  }
  0x26   : > { %1078 = vset.pattern.permute.xlu1 %v1158_v2 }
  0x27   : > { %328 = vperm.xlu1 %1078, %v199_v8  }
  0x28   : > { %238 = vperm.xlu0 %1084, %v200_v9  }
  0x2b   : > { %332 = vperm.xlu1 %1078, %v200_v9  }
  0x2c   : > { %243 = vperm.xlu0 %1084, %v1256_v3  }
  0x2f   : > { %1079 = vset.pattern.permute.xlu1 %v1159_v7 }
  0x30   : > { %258 = vperm.xlu0 %1084, %v1293_v10   ;;  %248 = vperm.xlu1 %1079, %v202_v11  }
  0x34   : > { %263 = vperm.xlu0 %1084, %v1268_v5   ;;  %1080 = vset.pattern.permute.xlu1 %v1158_v2 }
  0x35   : > { %340 = vperm.xlu1 %1080, %v202_v11  }
  0x38   : > { %278 = vperm.xlu0 %1084, %v1304_v12  }
  0x39   : > { %1081 = vset.pattern.permute.xlu1 %v1159_v7 }
  0x3a   : > { %253 = vperm.xlu1 %1081, %v203_v13  }
  0x3c   : > { %283 = vperm.xlu0 %1084, %v1313_v14  }
  0x3e   : > { %1082 = vset.pattern.permute.xlu1 %v1158_v2 }
  0x3f   : > { %344 = vperm.xlu1 %1082, %v203_v13  }
  0x40   : > { %1089 = vset.pattern.permute.xlu0 %v1158_v2 }
  0x41   : > { %368 = vperm.xlu0 %1089, %v1313_v14  }
  0x43   : > { %348 = vperm.xlu1 %1082, %v1293_v10  }
  0x45   : > { %1092 = vset.pattern.permute.xlu0 %v1160_v19 }
  0x46   : > { %428 = vperm.xlu0 %1092, %v1261_v4  }
  0x47   : > { %1083 = vset.pattern.permute.xlu1 %v1159_v7 }
  0x48   : > { %268 = vperm.xlu1 %1083, %v206_v15  }
  0x4a   : > { %440 = vperm.xlu0 %1092, %v199_v8  }
  0x4c   : > { %1085 = vset.pattern.permute.xlu1 %v1158_v2 }
  0x4d   : > { %356 = vperm.xlu1 %1085, %v206_v15  }
  0x4e   : > { %448 = vperm.xlu0 %1092, %v1256_v3  }
  0x51   : > { %1086 = vset.pattern.permute.xlu1 %v1159_v7 }
  0x52   : > { %273 = vperm.xlu1 %1086, %v207_v16   ;;  %456 = vperm.xlu0 %1092, %v203_v13  }
  0x56   : > { %1087 = vset.pattern.permute.xlu1 %v1158_v2  ;;  %464 = vperm.xlu0 %1092, %v1268_v5  }
  0x57   : > { %360 = vperm.xlu1 %1087, %v207_v16  }
  0x5a   : > { %472 = vperm.xlu0 %1092, %v207_v16  }
  0x5b   : > { %364 = vperm.xlu1 %1087, %v1304_v12  }
  0x5e   : > { %480 = vperm.xlu0 %1092, %v1313_v14  }
  0x5f   : > { %1088 = vset.pattern.permute.xlu1 %v1159_v7 }
  0x60   : > { %288 = vperm.xlu1 %1088, %v1332_v17  }
  0x64   : > { %1090 = vset.pattern.permute.xlu1 %v1158_v2 }
  0x65   : > { %372 = vperm.xlu1 %1090, %v1332_v17  }
  0x69   : > { %1091 = vset.pattern.permute.xlu1 %v1160_v19 }
  0x6a   : > { %424 = vperm.xlu1 %1091, %v1247_v1  }
  0x6e   : > { %432 = vperm.xlu1 %1091, %v1242_v0  }
  0x72   : > { %436 = vperm.xlu1 %1091, %v1273_v6  }
  0x76   : > { %444 = vperm.xlu1 %1091, %v200_v9  }
  0x7a   : > { %452 = vperm.xlu1 %1091, %v202_v11  }
  0x7e   : > { %460 = vperm.xlu1 %1091, %v1293_v10  }
  0x82   : > { %468 = vperm.xlu1 %1091, %v206_v15  }
  0x86   : > { %476 = vperm.xlu1 %1091, %v1304_v12  }
  0x8a   : > { %484 = vperm.xlu1 %1091, %v1332_v17  }
  0x8e   : > { %v313_v20 = vpop.permute.xlu1 %312  ;;  %v321_v21 = vpop.permute.xlu0 %320 }
  0x92   : > { %v317_v22 = vpop.permute.xlu1 %316  ;;  %v337_v23 = vpop.permute.xlu0 %336 }
  0x96   : > { %v1347_v24 = vpop.permute.xlu0 %352 }
  0x97   : > { %v229_v25 = vpop.permute.xlu1 %228 }
  0x98   : > { %v298_v34 = vmul.f32 %v1355_v26, %v229_v25 }
  0x9b   : > { %v214_v27 = vpop.permute.xlu0 %213 }
  0x9c   : > { %v295_v28 = vmul.f32 %v1355_v26, %v214_v27  ;;  %v325_v29 = vpop.permute.xlu1 %324 }
  0x9d   : > { %v378_v38 = vadd.f32 %v325_v29, %v298_v34 }
  0x9e   : > { %v375_v31 = vadd.f32 %v313_v20, %v295_v28 }
  0x9f   : > { %v219_v30 = vpop.permute.xlu0 %218  ;;  %v394_v46 = vmax.f32 %v378_v38, 0.0 }
  0xa0   : > { %v296_v32 = vmul.f32 %v1355_v26, %v219_v30  ;;  %v391_v37 = vmax.f32 %v375_v31, 0.0 }
  0xa1   : > { %v234_v33 = vpop.permute.xlu1 %233 }
  0xa2   : > { %v376_v35 = vadd.f32 %v317_v22, %v296_v32  ;;  %v299_v44 = vmul.f32 %v1355_v26, %v234_v33 }
  0xa3   : > { %v224_v36 = vpop.permute.xlu0 %223 }
  0xa4   : > { %v392_v39 = vmax.f32 %v376_v35, 0.0  ;;  %v297_v40 = vmul.f32 %v1355_v26, %v224_v36 }
  0xa6   : > { %v377_v41 = vadd.f32 %v321_v21, %v297_v40  ;;  %v329_v42 = vpop.permute.xlu1 %328  ;;  %v971_v43 = vpack.c.bf16 %v392_v39, %v391_v37 }
  0xa7   : > { %v239_v45 = vpop.permute.xlu0 %238  ;;  %v379_v49 = vadd.f32 %v329_v42, %v299_v44 }
  0xa8   : > { %v393_v47 = vmax.f32 %v377_v41, 0.0  ;;  %v300_v48 = vmul.f32 %v1355_v26, %v239_v45  ;;  %972 = vmatprep.subr.bf16.mxu0 %v971_v43 }
  0xa9   : > { %974 = vmatpush3.bf16.msra.mxu0 %v971_v43  ;;  %v395_v53 = vmax.f32 %v379_v49, 0.0  ;;  %v411_v49 = vld [vmem:[%s1487_s2 + $0x20] sm:$0xff] }
  0xaa   : > { %v333_v50 = vpop.permute.xlu1 %332  ;;  %v975_v51 = vpack.c.bf16 %v394_v46, %v393_v47  ;;  %v408_v47 = vld [vmem:[%s1487_s2 + $0x8] sm:$0xff] }
  0xab   : > { %v380_v52 = vadd.f32 %v333_v50, %v300_v48  ;;  %v244_v55 = vpop.permute.xlu0 %243  ;;  %v409_v48 = vld [vmem:[%s1487_s2 + $0x10] sm:$0xff]  ;;  %v412_v50 = vld [vmem:[%s1487_s2 + $0x28] sm:$0xff] }
  0xac   : > { %976 = vmatprep.subr.bf16.mxu0 %v975_v51  ;;  %v301_v57 = vmul.f32 %v1355_v26, %v244_v55  ;;  %v417_v55 = vld [vmem:[%s1487_s2 + $0x50] sm:$0xff] }
  0xad   : > { %v396_v54 = vmax.f32 %v380_v52, 0.0  ;;  %978 = vmatpush3.bf16.msra.mxu0 %v975_v51  ;;  %v413_v51 = vld [vmem:[%s1487_s2 + $0x30] sm:$0xff]  ;;  %v414_v52 = vld [vmem:[%s1487_s2 + $0x38] sm:$0xff] }
  0xae   : > { %v381_v59 = vadd.f32 %v337_v23, %v301_v57  ;;  %v419_v57 = vld [vmem:[%s1487_s2 + $0x60] sm:$0xff] }
  0xaf   : > { %v979_v56 = vpack.c.bf16 %v396_v54, %v395_v53  ;;  %v249_v58 = vpop.permute.xlu1 %248  ;;  %v259_v4 = vpop.permute.xlu0 %258  ;;  %v415_v53 = vld [vmem:[%s1487_s2 + $0x40] sm:$0xff]  ;;  %v416_v54 = vld [vmem:[%s1487_s2 + $0x48] sm:$0xff] }
  0xb0   : > { %v302_v60 = vmul.f32 %v1355_v26, %v249_v58  ;;  %v397_v63 = vmax.f32 %v381_v59, 0.0  ;;  %v304_v6 = vmul.f32 %v1355_v26, %v259_v4  ;;  %v420_v58 = vld [vmem:[%s1487_s2 + $0x68] sm:$0xff]  ;;  %v421_v59 = vld [vmem:[%s1487_s2 + $0x70] sm:$0xff] }
  0xb1   : > { %980 = vmatprep.subr.bf16.mxu0 %v979_v56 }
  0xb2   : > { %982 = vmatpush3.bf16.msra.mxu0 %v979_v56  ;;  %v418_v56 = vld [vmem:[%s1487_s2 + $0x58] sm:$0xff] }
  0xb3   : > { %v264_v11 = vpop.permute.xlu0 %263 }
  0xb4   : > { %v341_v61 = vpop.permute.xlu1 %340  ;;  %v305_v14 = vmul.f32 %v1355_v26, %v264_v11 }
  0xb5   : > { %v382_v62 = vadd.f32 %v341_v61, %v302_v60  ;;  %v422_v60 = vld [vmem:[%s1487_s2 + $0x78] sm:$0xff]  ;;  %v1161_v61 = vmov 0.0|0.0  }
  0xb6   : > { %v385_v17 = vadd.f32 %v1347_v24, %v305_v14  ;;  %1003 = vmatprep.subr.bf16.mxu1 %v1161_v61 }
  0xb7   : > { %v398_v0 = vmax.f32 %v382_v62, 0.0  ;;  %v279_v27 = vpop.permute.xlu0 %278  ;;  %v1163_v62 = vmov 0.0  }
  0xb8   : > { %v401_v21 = vmax.f32 %v385_v17, 0.0  ;;  %v308_v30 = vmul.f32 %v1355_v26, %v279_v27  ;;  %968 = vmatprep.mubr.msk.f32.mxu1 %vm1162_vm0, %v1163_v62 }
  0xb9   : > { %v983_v2 = vpack.c.bf16 %v398_v0, %v397_v63  ;;  %v254_v3 = vpop.permute.xlu1 %253  ;;  %v1164_v63 = vmov 3  }
  0xba   : > { %v303_v7 = vmul.f32 %v1355_v26, %v254_v3  ;;  %1093 = vset.pattern.permute.xlu0 %v1164_v63 }
  0xbb   : > { %984 = vmatprep.subr.bf16.mxu0 %v983_v2  ;;  %v284_v32 = vpop.permute.xlu0 %283  ;;  %650 = vperm.xlu0 %1093, %v1247_v1  }
  0xbc   : > { %986 = vmatpush3.bf16.msra.mxu0 %v983_v2  ;;  %v309_v36 = vmul.f32 %v1355_v26, %v284_v32 }
  0xbe   : > { %v345_v5 = vpop.permute.xlu1 %344 }
  0xbf   : > { %v383_v8 = vadd.f32 %v345_v5, %v303_v7 }
  0xc0   : > { %v369_v39 = vpop.permute.xlu0 %368 }
  0xc1   : > { %v399_v12 = vmax.f32 %v383_v8, 0.0  ;;  %v389_v40 = vadd.f32 %v369_v39, %v309_v36 }
  0xc2   : > { %v349_v9 = vpop.permute.xlu1 %348 }
  0xc3   : > { %v384_v10 = vadd.f32 %v349_v9, %v304_v6  ;;  %v405_v44 = vmax.f32 %v389_v40, 0.0 }
  0xc5   : > { %v400_v13 = vmax.f32 %v384_v10, 0.0  ;;  %v429_v4 = vpop.permute.xlu0 %428 }
  0xc7   : > { %v987_v15 = vpack.c.bf16 %v400_v13, %v399_v12  ;;  %v269_v16 = vpop.permute.xlu1 %268 }
  0xc8   : > { %v306_v18 = vmul.f32 %v1355_v26, %v269_v16 }
  0xc9   : > { %988 = vmatprep.subr.bf16.mxu0 %v987_v15  ;;  %v441_v6 = vpop.permute.xlu0 %440 }
  0xca   : > { %990 = vmatpush3.bf16.msra.mxu0 %v987_v15 }
  0xcc   : > { %v357_v19 = vpop.permute.xlu1 %356 }
  0xcd   : > { %v386_v20 = vadd.f32 %v357_v19, %v306_v18  ;;  %v449_v15 = vpop.permute.xlu0 %448 }
  0xcf   : > { %v402_v22 = vmax.f32 %v386_v20, 0.0 }
  0xd1   : > { %v991_v23 = vpack.c.bf16 %v402_v22, %v401_v21  ;;  %v274_v25 = vpop.permute.xlu1 %273 }
  0xd2   : > { %v307_v29 = vmul.f32 %v1355_v26, %v274_v25 }
  0xd3   : > { %992 = vmatprep.subr.bf16.mxu0 %v991_v23 }
  0xd4   : > { %994 = vmatpush3.bf16.msra.mxu0 %v991_v23 }
  0xd6   : > { %v361_v28 = vpop.permute.xlu1 %360 }
  0xd7   : > { %v387_v31 = vadd.f32 %v361_v28, %v307_v29  ;;  %v457_v29 = vpop.permute.xlu0 %456 }
  0xd9   : > { %v403_v34 = vmax.f32 %v387_v31, 0.0 }
  0xda   : > { %v365_v33 = vpop.permute.xlu1 %364 }
  0xdb   : > { %v388_v24 = vadd.f32 %v365_v33, %v308_v30  ;;  %v465_v40 = vpop.permute.xlu0 %464 }
  0xdd   : > { %v404_v35 = vmax.f32 %v388_v24, 0.0 }
  0xdf   : > { %v995_v37 = vpack.c.bf16 %v404_v35, %v403_v34  ;;  %v289_v38 = vpop.permute.xlu1 %288 }
  0xe0   : > { %v310_v41 = vmul.f32 %v1355_v26, %v289_v38  ;;  %v410_v26 = vld [vmem:[%s1487_s2 + $0x18] sm:$0xff] }
  0xe1   : > { %996 = vmatprep.subr.bf16.mxu0 %v995_v37 }
  0xe2   : > { %998 = vmatpush3.bf16.msra.mxu0 %v995_v37 }
  0xe4   : > { %v373_v42 = vpop.permute.xlu1 %372 }
  0xe5   : > { %v390_v43 = vadd.f32 %v373_v42, %v310_v41 }
  0xe7   : > { %v406_v45 = vmax.f32 %v390_v43, 0.0 }
  0xe9   : > { %v999_v46 = vpack.c.bf16 %v406_v45, %v405_v44  ;;  %v425_v0 = vpop.permute.xlu1 %424 }
  0xeb   : > { %1000 = vmatprep.subr.bf16.mxu0 %v999_v46 }
  0xec   : > { %1002 = vmatpush3.bf16.msra.mxu0 %v999_v46 }
  0xed   : > { %v433_v2 = vpop.permute.xlu1 %432 }
  0xef   : > { %913 = vmatmul.mubr.f32.vlgmr.msra.gmra.mrb[0].mxu0 %v408_v47 }
  0xf0   : > { %915 = vmatprep.mubr.f32.mxu0 %v409_v48 }
  0xf1   : > { %v437_v3 = vpop.permute.xlu1 %436 }
  0xf3   : > { %916 = vmatmul.mubr.f32.gmra.mrb[2].mxu0 %v410_v26 }
  0xf4   : > { %918 = vmatprep.mubr.f32.mxu0 %v411_v49 }
  0xf5   : > { %v445_v5 = vpop.permute.xlu1 %444 }
  0xf7   : > { %919 = vmatmul.mubr.f32.gmra.mrb[4].mxu0 %v412_v50 }
  0xf8   : > { %921 = vmatprep.mubr.f32.mxu0 %v413_v51 }
  0xf9   : > { %v453_v12 = vpop.permute.xlu1 %452 }
  0xfb   : > { %922 = vmatmul.mubr.f32.gmra.mrb[6].mxu0 %v414_v52  ;;  %v473_v52 = vpop.permute.xlu0 %472 }
  0xfc   : > { %924 = vmatprep.mubr.f32.mxu0 %v415_v53 }
  0xfd   : > { %v461_v25 = vpop.permute.xlu1 %460 }
  0xff   : > { %925 = vmatmul.mubr.f32.gmra.mrb[8].mxu0 %v416_v54 }
 0x100   : > { %927 = vmatprep.mubr.f32.mxu0 %v417_v55 }
 0x101   : > { %v469_v37 = vpop.permute.xlu1 %468 }
 0x103   : > { %928 = vmatmul.mubr.f32.gmra.mrb[10].mxu0 %v418_v56 }
 0x104   : > { %930 = vmatprep.mubr.f32.mxu0 %v419_v57 }
 0x105   : > { %v477_v49 = vpop.permute.xlu1 %476 }
 0x107   : > { %931 = vmatmul.mubr.f32.gmra.mrb[12].mxu0 %v420_v58 }
 0x108   : > { %933 = vmatprep.mubr.f32.mxu0 %v421_v59 }
 0x109   : > { %v485_v62 = vpop.permute.xlu1 %484 }
 0x10b   : > { %934 = vmatmul.mubr.f32.gmra.mrb[14].mxu0 %v422_v60 }
 0x1c2   : > { %v914_v7 = vpop.f32.mrb[0].mxu0 }
 0x1c3   : > { %v559_v8 = vadd.f32 %v914_v7, %v429_v4  ;;  %v553_v9 = vpop.f32.mrb[1].mxu0 }
 0x1c4   : > { %v554_v10 = vadd.f32 %v553_v9, %v425_v0 }
 0x1c5   : > { %v633_v11 = vmax.f32 %v559_v8, 0.0 }
 0x1c6   : > { %v632_v13 = vmax.f32 %v554_v10, 0.0  ;;  %v917_v14 = vpop.f32.mrb[2].mxu0  ;;  %v648_v10 = vld [vmem:[%s1488_s3] sm:$0xff] }
 0x1c7   : > { %v569_v16 = vadd.f32 %v917_v14, %v437_v3  ;;  %v563_v17 = vpop.f32.mrb[3].mxu0 }
 0x1c8   : > { %v564_v18 = vadd.f32 %v563_v17, %v433_v2  ;;  %v1004_v19 = vpack.c.bf16 %v633_v11, %v632_v13  ;;  %v481_v2 = vpop.permute.xlu0 %480  ;;  %v193_v13 = vld [vmem:[%s1352_s5 + $0x1] sm:$0x1] }
 0x1c9   : > { %v635_v1 = vmax.f32 %v569_v16, 0.0 }
 0x1ca   : > { %v634_v20 = vmax.f32 %v564_v18, 0.0  ;;  %v920_v21 = vpop.f32.mrb[4].mxu0  ;;  %1005 = vmatpush3.bf16.msra.mxu1 %v1004_v19 }
 0x1cb   : > { %v579_v22 = vadd.f32 %v920_v21, %v445_v5  ;;  %v573_v23 = vpop.f32.mrb[5].mxu0  ;;  %1006 = vmatprep.subr.bf16.mxu1 %v1161_v61 }
 0x1cc   : > { %v1007_v27 = vpack.c.bf16 %v635_v1, %v634_v20  ;;  %v574_v28 = vadd.f32 %v573_v23, %v441_v6  ;;  %v651_v11 = vpop.permute.xlu0 %650  ;;  %v731_v1 = vrot.slane %v193_v13, 7 }
 0x1cd   : > { %v637_v30 = vmax.f32 %v579_v22, 0.0 }
 0x1ce   : > { %v636_v31 = vmax.f32 %v574_v28, 0.0  ;;  %v923_v32 = vpop.f32.mrb[6].mxu0  ;;  %1008 = vmatpush3.bf16.msra.mxu1 %v1007_v27 }
 0x1cf   : > { %v589_v33 = vadd.f32 %v923_v32, %v453_v12  ;;  %v583_v24 = vpop.f32.mrb[7].mxu0  ;;  %1009 = vmatprep.subr.bf16.mxu1 %v1161_v61  ;;  %v194_v12 = vld [vmem:[%s1352_s5 + $0x2] sm:$0x1]  ;;  %s828_s5 = sshll.u32 %s1212_s19, 4  ;;  %s1165_s19 = smov [#allocation2]  }
 0x1d0   : > { %v1010_v34 = vpack.c.bf16 %v637_v30, %v636_v31  ;;  %v584_v35 = vadd.f32 %v583_v24, %v449_v15  ;;  %v742_v16 = vrot.slane %v194_v12, 5  ;;  %v735_v21 = vrot.slane %v194_v12, 7  ;;  %s1443_s11 = scalar_lea.hbm %s1489_s4, %s828_s5  ;;  %s1098_s14 = sshll.u32 %s1165_s19, 4  ;;  %s1099_s14 = int_to_ptr.vmem [resolvable:$false] %s1098_s14 }
 0x1d1   : > { %v639_v36 = vmax.f32 %v589_v33, 0.0  ;;  %s1100_s20 = scalar_lea.vmem %s1099_s14, 32  ;;  %p1101_p0 = scmp.lt.s32.totalorder %s1445_s8, %s1099_s14 }
 0x1d2   : > { %v638_v38 = vmax.f32 %v584_v35, 0.0  ;;  %v926_v39 = vpop.f32.mrb[8].mxu0  ;;  %1011 = vmatpush3.bf16.msra.mxu1 %v1010_v34  ;;  %p1102_p1 = scmp.lt.s32.totalorder %s1100_s20, %s1094_s13 }
 0x1d3   : > { %v599_v41 = vadd.f32 %v926_v39, %v461_v25  ;;  %v593_v42 = vpop.f32.mrb[9].mxu0  ;;  %1012 = vmatprep.subr.bf16.mxu1 %v1161_v61 }
 0x1d4   : > { %v1013_v43 = vpack.c.bf16 %v639_v36, %v638_v38  ;;  %v594_v44 = vadd.f32 %v593_v42, %v457_v29  ;;  %p1103_p2 = por %p1102_p1, %p1101_p0 }
 0x1d5   : > { %v641_v45 = vmax.f32 %v599_v41, 0.0 }
 0x1d6   : > { %v640_v46 = vmax.f32 %v594_v44, 0.0  ;;  %v929_v47 = vpop.f32.mrb[10].mxu0  ;;  %1014 = vmatpush3.bf16.msra.mxu1 %v1013_v43  ;;  %p1104_p3 = pnand %p1103_p2, %p1097_p13 }
 0x1d7   : > { %v609_v48 = vadd.f32 %v929_v47, %v469_v37  ;;  %v603_v26 = vpop.f32.mrb[11].mxu0  ;;  %1015 = vmatprep.subr.bf16.mxu1 %v1161_v61 }
 0x1d8   : > { %v1016_v50 = vpack.c.bf16 %v641_v45, %v640_v46  ;;  %v604_v51 = vadd.f32 %v603_v26, %v465_v40 }
 0x1d9   : > { %v643_v53 = vmax.f32 %v609_v48, 0.0 }
 0x1da   : > { %v642_v54 = vmax.f32 %v604_v51, 0.0  ;;  %v932_v55 = vpop.f32.mrb[12].mxu0  ;;  %1017 = vmatpush3.bf16.msra.mxu1 %v1016_v50 }
 0x1db   : > { %v619_v56 = vadd.f32 %v932_v55, %v477_v49  ;;  %v613_v57 = vpop.f32.mrb[13].mxu0  ;;  %1018 = vmatprep.subr.bf16.mxu1 %v1161_v61 }
 0x1dc   : > { %v1019_v58 = vpack.c.bf16 %v643_v53, %v642_v54  ;;  %v614_v59 = vadd.f32 %v613_v57, %v473_v52 }
 0x1dd   : > { %v645_v60 = vmax.f32 %v619_v56, 0.0 }
 0x1de   : > { %v644_v63 = vmax.f32 %v614_v59, 0.0  ;;  %v935_v0 = vpop.f32.mrb[14].mxu0  ;;  %1020 = vmatpush3.bf16.msra.mxu1 %v1019_v58 }
 0x1df   : > { %v629_v3 = vadd.f32 %v935_v0, %v485_v62  ;;  %v623_v4 = vpop.f32.mrb[15].mxu0  ;;  %1021 = vmatprep.subr.bf16.mxu1 %v1161_v61 }
 0x1e0   : > { %v1022_v5 = vpack.c.bf16 %v645_v60, %v644_v63  ;;  %v624_v6 = vadd.f32 %v623_v4, %v481_v2 }
 0x1e1   : > { %v647_v7 = vmax.f32 %v629_v3, 0.0 }
 0x1e2   : > { %v646_v8 = vmax.f32 %v624_v6, 0.0  ;;  %1023 = vmatpush3.bf16.msra.mxu1 %v1022_v5 }
 0x1e3   : > { %1024 = vmatprep.subr.bf16.mxu1 %v1161_v61 }
 0x1e4   : > { %v1025_v9 = vpack.c.bf16 %v647_v7, %v646_v8 }
 0x1e6   : > { %1026 = vmatpush3.bf16.msra.mxu1 %v1025_v9 }
 0x1e9   : > { %969 = vmatmul.mubr.f32.vlgmr.msra.gmra.mrb[0].mxu1 %v648_v10 }
 0x2bc   : > { %v719_v14 = vpop.f32.mrb[0].mxu1 }
 0x2bd   : > { %v720_v15 = vadd.f32 %v719_v14, %v651_v11  ;;  %v970_v17 = vpop.f32.mrb[1].mxu1 }
 0x2bf   : > { %v723_v18 = vadd.f32 0.001, %v720_v15  ;;  %v727_v19 = vrot.slane %v720_v15, 1  ;;  %v750_v33 = vrot.slane %v720_v15, 4 }
 0x2c1   : > { %v729_v61 = vadd.f32 %v727_v19, %v720_v15  ;;  %v744_v20 = vmul.f32 %v742_v16, %v723_v18  ;;  %v724_v22 = vmul.f32 %v723_v18, %v193_v13 }
 0x2c3   : > { %v733_v23 = vmul.f32 %v731_v1, %v729_v61  ;;  %v745_v27 = vmul.f32 %v744_v20, %v742_v16  ;;  %v725_v28 = vmul.f32 %v724_v22, %v193_v13 }
 0x2c5   : > { %v737_v25 = vmul.f32 %v735_v21, %v733_v23  ;;  %v747_v31 = vrot.slane %v745_v27, 3 }
 0x2c7   : > { %v739_v29 = vrot.slane %v737_v25, 1 }
 0x2c9   : > { %v741_v30 = vadd.f32 %v739_v29, %v725_v28 }
 0x2cb   : > { %v749_v32 = vadd.f32 %v747_v31, %v741_v30 }
 0x2cd   : > { %v752_v24 = vadd.f32 %v750_v33, %v749_v32 }
 0x2cf   : > { %753 = vst [vmem:[%s187_s7] sm:$0x1] %v752_v24 }
 0x2d0   : > { %1107 = shalt.err (!%p1104_p3)
}
 0x2d1   : > { %s1108_s22 = scalar_lea.hbm %s1443_s11, 16  ;;  %s1112_s28 = scalar_lea.hbm %s1489_s4, 32 }
 0x2d2   : > { %p1109_p4 = scmp.ne.s32.totalorder %s1443_s11, %s1108_s22  ;;  %p1113_p9 = scmp.lt.u32.totalorder %s1443_s11, %s1489_s4 }
 0x2d3   : > { %p1114_p10 = scmp.lt.u32.totalorder %s1112_s28, %s1108_s22  ;;  %p1116_p12 = scmp.lt.u32.totalorder %s1108_s22, %s1443_s11 }
 0x2d4   : > { %p1110_p7 = pnand %p1109_p4, %p1229_p5 }
 0x2d5   : > { %p1115_p11 = por %p1114_p10, %p1113_p9 }
 0x2d6   : > { %p1111_p8 = pneg %p1110_p7 }
 0x2d7   : > { %p1117_p13 = por %p1116_p12, %p1115_p11 }
 0x2d9   : > { %p1118_p0 = pnand %p1117_p13, %p1111_p8 }
 0x2db   : > { %1121 = shalt.err (!%p1118_p0)
}
 0x2dc   : > { %1027 = dma.vmem_to_hbm [thread:$0]  (%p1229_p5), %s1445_s8, 16, %s1443_s11, %s755_s12  }
 0x2dd PF: > { %p1033_p1 = scmp.ge.s32.totalorder %s1156_s18, 2  ;;  %s779_s6 = sand.u32 1, %s1144_s15  }
 0x2de   : > { %s780_s5 = scalar_lea.sflag [#allocation3], %s779_s6 }
 0x2df   : > { %p1030_p2 = pnand %p1033_p1, %p1233_p6 }
 0x2e1   : > { %1139 = dma.done.wait (!%p1030_p2), %s780_s5, 16  }
 0x2e2   : > { %1141 = vsyncadd (!%p1030_p2), %s780_s5, 4294967280  ;;  %p14_p3 = scmp.ge.s32.totalorder %s1216_s21, 4   ;;  %s1492_s15 = smov %s1148_s16 }
 0x2e3   : > { %s1493_s16 = smov %s1152_s17  ;;  %s1494_s17 = smov %s1227_s24 }
 0x2e4   : > { %s1495_s18 = smov %s1216_s21  ;;  %16 = sbr.rel (!%p14_p3) target bundleno = 3 (0x3), region = 71 }
 0x2eb   :  { %784 = vsyncpa [#allocation3], 1 }
 0x2ec   :  { %786 = vsyncpa [#allocation3 + $0x1], 1 }

</bundles_post_ra>
